<compile_context>
chip_gen: v6e
topology: v6e:2x2x1
jax: 0.10.0
libtpu: 0.0.40
codegen_flags: <defaults>
</compile_context>

<pallas_src>
import jax
import jax.numpy as jnp
from jax.experimental import pallas as pl
from jax.experimental.pallas import tpu as pltpu


_SQRT_HALF = 0.7071067811865476


def _gelu_exact(x):
    """Exact (erf-based) GELU matching torch.nn.GELU() default.

    erf is evaluated with the Abramowitz & Stegun 7.1.26 polynomial
    (max abs error ~1.5e-7), so only ops that lower cleanly in Mosaic are used
    (VPU mul/add/select, one divide, one EUP exp).
    """
    z = x * _SQRT_HALF
    za = jnp.where(z >= 0.0, z, -z)
    t = 1.0 / (1.0 + 0.3275911 * za)
    poly = ((((1.061405429 * t - 1.453152027) * t + 1.421413741) * t
             - 0.284496736) * t + 0.254829592) * t
    erf_abs = 1.0 - poly * jnp.exp(-za * za)
    erf = jnp.where(z >= 0.0, erf_abs, -erf_abs)
    return 0.5 * x * (1.0 + erf)


def _make_kernel(bt, C, T, K):
    total = K - 1
    left = total // 2            # torch Conv1d padding='same' left pad
    right = total - left

    def kernel(x_ref, w1_ref, b1_ref, w2_ref, b2_ref, out_ref, pad_ref):
        # x_ref / out_ref: (bt, C, T)    w*_ref: (K, C, C)    b*_ref: (C, 1)
        # pad_ref: VMEM (C, T + K - 1) scratch, reused by both convs.

        # Zero only the halo columns; the middle region is always overwritten.
        if left > 0:
            pad_ref[:, :left] = jnp.zeros((C, left), jnp.float32)
        if right > 0:
            pad_ref[:, left + T:] = jnp.zeros((C, right), jnp.float32)

        for b in range(bt):                      # static unroll over batch tile
            xb = x_ref[b]                        # (C, T), also the residual

            # ---- conv1 (padding='same') + GELU ----
            pad_ref[:, left:left + T] = xb
            acc = jnp.zeros((C, T), jnp.float32)
            for k in range(K):                   # static unroll over taps
                acc = acc + jnp.dot(w1_ref[k], pad_ref[:, k:k + T],
                                    preferred_element_type=jnp.float32)
            h = _gelu_exact(acc + b1_ref[...])   # (C, T) + (C, 1)

            # ---- conv2 (padding='same') + residual ----
            pad_ref[:, left:left + T] = h
            acc2 = jnp.zeros((C, T), jnp.float32)
            for k in range(K):
                acc2 = acc2 + jnp.dot(w2_ref[k], pad_ref[:, k:k + T],
                                      preferred_element_type=jnp.float32)
            out_ref[b] = (acc2 + b2_ref[...] + xb).astype(out_ref.dtype)

    return kernel


def simple_res_block(x_nct, params, *, kernel_size, batch_tile=None):
    """x_nct: [B, C, T] float (PyTorch Conv1d layout). Returns [B, C, T] float32."""
    B, C, T = x_nct.shape
    K = kernel_size
    x = x_nct.astype(jnp.float32)

    # torch Conv1d weight [C_out, C_in, K] -> per-tap matmul weights [K, C_out, C_in]
    w1 = jnp.transpose(params["w1"], (2, 0, 1)).astype(jnp.float32)
    w2 = jnp.transpose(params["w2"], (2, 0, 1)).astype(jnp.float32)
    b1 = params["b1"].astype(jnp.float32)[:, None]   # (C, 1): varies along sublanes
    b2 = params["b2"].astype(jnp.float32)[:, None]

    if batch_tile is None:
        # Largest batch divisor whose (double-buffered) in+out blocks stay well
        # inside the scoped-VMEM budget.
        budget = 8 * 1024 * 1024
        batch_tile = 1
        for cand in range(B, 0, -1):
            if B % cand == 0 and 4 * cand * C * T * 4 <= budget:
                batch_tile = cand
                break
    bt = batch_tile
    assert B % bt == 0, "batch_tile must divide batch"

    kernel = _make_kernel(bt, C, T, K)

    grid_spec = pltpu.PrefetchScalarGridSpec(
        num_scalar_prefetch=0,
        grid=(B // bt,),
        in_specs=[
            pl.BlockSpec((bt, C, T), lambda i: (i, 0, 0)),   # x
            pl.BlockSpec((K, C, C), lambda i: (0, 0, 0)),    # conv1 weight
            pl.BlockSpec((C, 1), lambda i: (0, 0)),          # conv1 bias
            pl.BlockSpec((K, C, C), lambda i: (0, 0, 0)),    # conv2 weight
            pl.BlockSpec((C, 1), lambda i: (0, 0)),          # conv2 bias
        ],
        out_specs=pl.BlockSpec((bt, C, T), lambda i: (i, 0, 0)),
        scratch_shapes=[pltpu.VMEM((C, T + K - 1), jnp.float32)],
    )
    return pl.pallas_call(
        kernel,
        out_shape=jax.ShapeDtypeStruct((B, C, T), jnp.float32),
        grid_spec=grid_spec,
        compiler_params=pltpu.CompilerParams(dimension_semantics=("parallel",)),
    )(x, w1, b1, w2, b2)


# ---------------- pure-JAX reference (torch Conv1d / nn.GELU semantics) ----------------
def _conv1d_same_ref(x, w, b):
    K = w.shape[-1]
    total = K - 1
    left = total // 2
    xp = jnp.pad(x, ((0, 0), (0, 0), (left, total - left)))
    y = jax.lax.conv_general_dilated(
        xp, w, window_strides=(1,), padding="VALID",
        dimension_numbers=("NCH", "OIH", "NCH"))
    return y + b[None, :, None]


def _simple_res_block_ref(x, p):
    h = jax.nn.gelu(_conv1d_same_ref(x, p["w1"], p["b1"]), approximate=False)
    y = _conv1d_same_ref(h, p["w2"], p["b2"])
    return y + x


if __name__ == "__main__":
    B, C, T = 2, 8, 128          # [batch, emb, time]
    K = 5

    key = jax.random.PRNGKey(0)
    keys = jax.random.split(key, 5)
    s = 1.0 / (C * K) ** 0.5
    params = {
        "w1": jax.random.uniform(keys[0], (C, C, K), jnp.float32, -s, s),
        "b1": jax.random.uniform(keys[1], (C,), jnp.float32, -s, s),
        "w2": jax.random.uniform(keys[2], (C, C, K), jnp.float32, -s, s),
        "b2": jax.random.uniform(keys[3], (C,), jnp.float32, -s, s),
    }
    x = jax.random.normal(keys[4], (B, C, T), jnp.float32)

    out = simple_res_block(x, params, kernel_size=K)
    out = jax.block_until_ready(out)

    ref = _simple_res_block_ref(x, params)
    assert out.shape == (B, C, T)
    err = float(jnp.max(jnp.abs(out - ref)))
    assert jnp.allclose(out, ref, atol=2e-5, rtol=2e-5), f"max abs err = {err}"
    print("KERNEL_OK")
</pallas_src>

<mosaic_0001>
module attributes {stable_mosaic.version = 11 : i64} {
  func.func @kernel(%arg0: i32, %arg1: memref<2x8x128xf32, #tpu.memory_space<vmem>>, %arg2: memref<5x8x8xf32, #tpu.memory_space<vmem>>, %arg3: memref<8x1xf32, #tpu.memory_space<vmem>>, %arg4: memref<5x8x8xf32, #tpu.memory_space<vmem>>, %arg5: memref<8x1xf32, #tpu.memory_space<vmem>>, %arg6: memref<2x8x128xf32, #tpu.memory_space<vmem>>, %arg7: memref<8x132xf32, #tpu.memory_space<vmem>>) attributes {dimension_semantics = [#tpu.dimension_semantics<parallel>], iteration_bounds = array<i64: 1>, scalar_prefetch = 0 : i64, scratch_operands = 1 : i64, tpu.core_type = #tpu.core_type<tc>, window_params = [{transform_indices = @transform_0, window_bounds = array<i64: 2, 8, 128>}, {pipeline_mode = #tpu.pipeline_mode<synchronous>, transform_indices = @transform_1, window_bounds = array<i64: 5, 8, 8>}, {pipeline_mode = #tpu.pipeline_mode<synchronous>, transform_indices = @transform_2, window_bounds = array<i64: 8, 1>}, {pipeline_mode = #tpu.pipeline_mode<synchronous>, transform_indices = @transform_3, window_bounds = array<i64: 5, 8, 8>}, {pipeline_mode = #tpu.pipeline_mode<synchronous>, transform_indices = @transform_4, window_bounds = array<i64: 8, 1>}, {transform_indices = @transform_5, window_bounds = array<i64: 2, 8, 128>}]} {
    %cst = arith.constant 0.000000e+00 : f32
    %0 = vector.broadcast %cst : f32 to vector<8x2xf32>
    %c0 = arith.constant 0 : index
    %c0_0 = arith.constant 0 : index
    %1 = vector.load %arg7[%c0, %c0_0] : memref<8x132xf32, #tpu.memory_space<vmem>>, vector<8x2xf32>
    tpu.vector_store %arg7[%c0, %c0_0], %0 {strides = array<i32>} : memref<8x132xf32, #tpu.memory_space<vmem>>, vector<8x2xf32>,
    %cst_1 = arith.constant 0.000000e+00 : f32
    %2 = vector.broadcast %cst_1 : f32 to vector<8x2xf32>
    %c0_2 = arith.constant 0 : index
    %c130 = arith.constant 130 : index
    %3 = vector.load %arg7[%c0_2, %c130] : memref<8x132xf32, #tpu.memory_space<vmem>>, vector<8x2xf32>
    tpu.vector_store %arg7[%c0_2, %c130], %2 {strides = array<i32>} : memref<8x132xf32, #tpu.memory_space<vmem>>, vector<8x2xf32>,
    %c0_3 = arith.constant 0 : index
    %c0_4 = arith.constant 0 : index
    %c0_5 = arith.constant 0 : index
    %4 = vector.load %arg1[%c0_3, %c0_4, %c0_5] : memref<2x8x128xf32, #tpu.memory_space<vmem>>, vector<1x8x128xf32>
    %5 = vector.shape_cast %4 : vector<1x8x128xf32> to vector<8x128xf32>
    %c0_6 = arith.constant 0 : index
    %c2 = arith.constant 2 : index
    %6 = vector.load %arg7[%c0_6, %c2] : memref<8x132xf32, #tpu.memory_space<vmem>>, vector<8x128xf32>
    tpu.vector_store %arg7[%c0_6, %c2], %5 {strides = array<i32>} : memref<8x132xf32, #tpu.memory_space<vmem>>, vector<8x128xf32>,
    %cst_7 = arith.constant 0.000000e+00 : f32
    %7 = vector.broadcast %cst_7 : f32 to vector<8x128xf32>
    %c0_8 = arith.constant 0 : index
    %c0_9 = arith.constant 0 : index
    %c0_10 = arith.constant 0 : index
    %8 = vector.load %arg2[%c0_8, %c0_9, %c0_10] : memref<5x8x8xf32, #tpu.memory_space<vmem>>, vector<1x8x8xf32>
    %9 = vector.shape_cast %8 : vector<1x8x8xf32> to vector<8x8xf32>
    %c0_11 = arith.constant 0 : index
    %c0_12 = arith.constant 0 : index
    %10 = vector.load %arg7[%c0_11, %c0_12] : memref<8x132xf32, #tpu.memory_space<vmem>>, vector<8x128xf32>
    %cst_13 = arith.constant dense<0.000000e+00> : vector<8x128xf32>
    %11 = tpu.matmul %9, %10, %cst_13 {dimension_numbers = #tpu.dot_dimension_numbers<[1], [0], [0], [1], [0, 0, 1, 1], [], []>} : vector<8x8xf32>, vector<8x128xf32>, vector<8x128xf32> -> vector<8x128xf32>
    %12 = arith.addf %7, %11 : vector<8x128xf32>
    %c1 = arith.constant 1 : index
    %c0_14 = arith.constant 0 : index
    %c0_15 = arith.constant 0 : index
    %13 = vector.load %arg2[%c1, %c0_14, %c0_15] : memref<5x8x8xf32, #tpu.memory_space<vmem>>, vector<1x8x8xf32>
    %14 = vector.shape_cast %13 : vector<1x8x8xf32> to vector<8x8xf32>
    %c0_16 = arith.constant 0 : index
    %c1_17 = arith.constant 1 : index
    %15 = vector.load %arg7[%c0_16, %c1_17] : memref<8x132xf32, #tpu.memory_space<vmem>>, vector<8x128xf32>
    %cst_18 = arith.constant dense<0.000000e+00> : vector<8x128xf32>
    %16 = tpu.matmul %14, %15, %cst_18 {dimension_numbers = #tpu.dot_dimension_numbers<[1], [0], [0], [1], [0, 0, 1, 1], [], []>} : vector<8x8xf32>, vector<8x128xf32>, vector<8x128xf32> -> vector<8x128xf32>
    %17 = arith.addf %12, %16 : vector<8x128xf32>
    %c2_19 = arith.constant 2 : index
    %c0_20 = arith.constant 0 : index
    %c0_21 = arith.constant 0 : index
    %18 = vector.load %arg2[%c2_19, %c0_20, %c0_21] : memref<5x8x8xf32, #tpu.memory_space<vmem>>, vector<1x8x8xf32>
    %19 = vector.shape_cast %18 : vector<1x8x8xf32> to vector<8x8xf32>
    %c0_22 = arith.constant 0 : index
    %c2_23 = arith.constant 2 : index
    %20 = vector.load %arg7[%c0_22, %c2_23] : memref<8x132xf32, #tpu.memory_space<vmem>>, vector<8x128xf32>
    %cst_24 = arith.constant dense<0.000000e+00> : vector<8x128xf32>
    %21 = tpu.matmul %19, %20, %cst_24 {dimension_numbers = #tpu.dot_dimension_numbers<[1], [0], [0], [1], [0, 0, 1, 1], [], []>} : vector<8x8xf32>, vector<8x128xf32>, vector<8x128xf32> -> vector<8x128xf32>
    %22 = arith.addf %17, %21 : vector<8x128xf32>
    %c3 = arith.constant 3 : index
    %c0_25 = arith.constant 0 : index
    %c0_26 = arith.constant 0 : index
    %23 = vector.load %arg2[%c3, %c0_25, %c0_26] : memref<5x8x8xf32, #tpu.memory_space<vmem>>, vector<1x8x8xf32>
    %24 = vector.shape_cast %23 : vector<1x8x8xf32> to vector<8x8xf32>
    %c0_27 = arith.constant 0 : index
    %c3_28 = arith.constant 3 : index
    %25 = vector.load %arg7[%c0_27, %c3_28] : memref<8x132xf32, #tpu.memory_space<vmem>>, vector<8x128xf32>
    %cst_29 = arith.constant dense<0.000000e+00> : vector<8x128xf32>
    %26 = tpu.matmul %24, %25, %cst_29 {dimension_numbers = #tpu.dot_dimension_numbers<[1], [0], [0], [1], [0, 0, 1, 1], [], []>} : vector<8x8xf32>, vector<8x128xf32>, vector<8x128xf32> -> vector<8x128xf32>
    %27 = arith.addf %22, %26 : vector<8x128xf32>
    %c4 = arith.constant 4 : index
    %c0_30 = arith.constant 0 : index
    %c0_31 = arith.constant 0 : index
    %28 = vector.load %arg2[%c4, %c0_30, %c0_31] : memref<5x8x8xf32, #tpu.memory_space<vmem>>, vector<1x8x8xf32>
    %29 = vector.shape_cast %28 : vector<1x8x8xf32> to vector<8x8xf32>
    %c0_32 = arith.constant 0 : index
    %c4_33 = arith.constant 4 : index
    %30 = vector.load %arg7[%c0_32, %c4_33] : memref<8x132xf32, #tpu.memory_space<vmem>>, vector<8x128xf32>
    %cst_34 = arith.constant dense<0.000000e+00> : vector<8x128xf32>
    %31 = tpu.matmul %29, %30, %cst_34 {dimension_numbers = #tpu.dot_dimension_numbers<[1], [0], [0], [1], [0, 0, 1, 1], [], []>} : vector<8x8xf32>, vector<8x128xf32>, vector<8x128xf32> -> vector<8x128xf32>
    %32 = arith.addf %27, %31 : vector<8x128xf32>
    %c0_35 = arith.constant 0 : index
    %c0_36 = arith.constant 0 : index
    %33 = vector.load %arg3[%c0_35, %c0_36] : memref<8x1xf32, #tpu.memory_space<vmem>>, vector<8x1xf32>
    %34 = vector.broadcast %33 : vector<8x1xf32> to vector<8x128xf32>
    %35 = arith.addf %32, %34 : vector<8x128xf32>
    %cst_37 = arith.constant 0.707106769 : f32
    %36 = vector.broadcast %cst_37 : f32 to vector<8x128xf32>
    %37 = arith.mulf %35, %36 : vector<8x128xf32>
    %cst_38 = arith.constant 0.000000e+00 : f32
    %38 = vector.broadcast %cst_38 : f32 to vector<8x128xf32>
    %39 = arith.cmpf oge, %37, %38 : vector<8x128xf32>
    %cst_39 = arith.constant 0.000000e+00 : f32
    %40 = vector.broadcast %cst_39 : f32 to vector<8x128xf32>
    %41 = arith.subf %40, %37 : vector<8x128xf32>
    %42 = arith.select %39, %37, %41 : vector<8x128xi1>, vector<8x128xf32>
    %cst_40 = arith.constant 0.327591091 : f32
    %43 = vector.broadcast %cst_40 : f32 to vector<8x128xf32>
    %44 = arith.mulf %43, %42 : vector<8x128xf32>
    %cst_41 = arith.constant 1.000000e+00 : f32
    %45 = vector.broadcast %cst_41 : f32 to vector<8x128xf32>
    %46 = arith.addf %45, %44 : vector<8x128xf32>
    %cst_42 = arith.constant 1.000000e+00 : f32
    %47 = vector.broadcast %cst_42 : f32 to vector<8x128xf32>
    %48 = arith.divf %47, %46 : vector<8x128xf32>
    %cst_43 = arith.constant 1.06140542 : f32
    %49 = vector.broadcast %cst_43 : f32 to vector<8x128xf32>
    %50 = arith.mulf %49, %48 : vector<8x128xf32>
    %cst_44 = arith.constant 1.45315206 : f32
    %51 = vector.broadcast %cst_44 : f32 to vector<8x128xf32>
    %52 = arith.subf %50, %51 : vector<8x128xf32>
    %53 = arith.mulf %52, %48 : vector<8x128xf32>
    %cst_45 = arith.constant 1.42141378 : f32
    %54 = vector.broadcast %cst_45 : f32 to vector<8x128xf32>
    %55 = arith.addf %53, %54 : vector<8x128xf32>
    %56 = arith.mulf %55, %48 : vector<8x128xf32>
    %cst_46 = arith.constant 0.284496725 : f32
    %57 = vector.broadcast %cst_46 : f32 to vector<8x128xf32>
    %58 = arith.subf %56, %57 : vector<8x128xf32>
    %59 = arith.mulf %58, %48 : vector<8x128xf32>
    %cst_47 = arith.constant 0.254829586 : f32
    %60 = vector.broadcast %cst_47 : f32 to vector<8x128xf32>
    %61 = arith.addf %59, %60 : vector<8x128xf32>
    %62 = arith.mulf %61, %48 : vector<8x128xf32>
    %cst_48 = arith.constant 0.000000e+00 : f32
    %63 = vector.broadcast %cst_48 : f32 to vector<8x128xf32>
    %64 = arith.subf %63, %42 : vector<8x128xf32>
    %65 = arith.mulf %64, %42 : vector<8x128xf32>
    %66 = math.exp %65 : vector<8x128xf32>
    %67 = arith.mulf %62, %66 : vector<8x128xf32>
    %cst_49 = arith.constant 1.000000e+00 : f32
    %68 = vector.broadcast %cst_49 : f32 to vector<8x128xf32>
    %69 = arith.subf %68, %67 : vector<8x128xf32>
    %cst_50 = arith.constant 0.000000e+00 : f32
    %70 = vector.broadcast %cst_50 : f32 to vector<8x128xf32>
    %71 = arith.cmpf oge, %37, %70 : vector<8x128xf32>
    %cst_51 = arith.constant 0.000000e+00 : f32
    %72 = vector.broadcast %cst_51 : f32 to vector<8x128xf32>
    %73 = arith.subf %72, %69 : vector<8x128xf32>
    %74 = arith.select %71, %69, %73 : vector<8x128xi1>, vector<8x128xf32>
    %cst_52 = arith.constant 5.000000e-01 : f32
    %75 = vector.broadcast %cst_52 : f32 to vector<8x128xf32>
    %76 = arith.mulf %75, %35 : vector<8x128xf32>
    %cst_53 = arith.constant 1.000000e+00 : f32
    %77 = vector.broadcast %cst_53 : f32 to vector<8x128xf32>
    %78 = arith.addf %77, %74 : vector<8x128xf32>
    %79 = arith.mulf %76, %78 : vector<8x128xf32>
    %c0_54 = arith.constant 0 : index
    %c2_55 = arith.constant 2 : index
    %80 = vector.load %arg7[%c0_54, %c2_55] : memref<8x132xf32, #tpu.memory_space<vmem>>, vector<8x128xf32>
    tpu.vector_store %arg7[%c0_54, %c2_55], %79 {strides = array<i32>} : memref<8x132xf32, #tpu.memory_space<vmem>>, vector<8x128xf32>,
    %cst_56 = arith.constant 0.000000e+00 : f32
    %81 = vector.broadcast %cst_56 : f32 to vector<8x128xf32>
    %c0_57 = arith.constant 0 : index
    %c0_58 = arith.constant 0 : index
    %c0_59 = arith.constant 0 : index
    %82 = vector.load %arg4[%c0_57, %c0_58, %c0_59] : memref<5x8x8xf32, #tpu.memory_space<vmem>>, vector<1x8x8xf32>
    %83 = vector.shape_cast %82 : vector<1x8x8xf32> to vector<8x8xf32>
    %c0_60 = arith.constant 0 : index
    %c0_61 = arith.constant 0 : index
    %84 = vector.load %arg7[%c0_60, %c0_61] : memref<8x132xf32, #tpu.memory_space<vmem>>, vector<8x128xf32>
    %cst_62 = arith.constant dense<0.000000e+00> : vector<8x128xf32>
    %85 = tpu.matmul %83, %84, %cst_62 {dimension_numbers = #tpu.dot_dimension_numbers<[1], [0], [0], [1], [0, 0, 1, 1], [], []>} : vector<8x8xf32>, vector<8x128xf32>, vector<8x128xf32> -> vector<8x128xf32>
    %86 = arith.addf %81, %85 : vector<8x128xf32>
    %c1_63 = arith.constant 1 : index
    %c0_64 = arith.constant 0 : index
    %c0_65 = arith.constant 0 : index
    %87 = vector.load %arg4[%c1_63, %c0_64, %c0_65] : memref<5x8x8xf32, #tpu.memory_space<vmem>>, vector<1x8x8xf32>
    %88 = vector.shape_cast %87 : vector<1x8x8xf32> to vector<8x8xf32>
    %c0_66 = arith.constant 0 : index
    %c1_67 = arith.constant 1 : index
    %89 = vector.load %arg7[%c0_66, %c1_67] : memref<8x132xf32, #tpu.memory_space<vmem>>, vector<8x128xf32>
    %cst_68 = arith.constant dense<0.000000e+00> : vector<8x128xf32>
    %90 = tpu.matmul %88, %89, %cst_68 {dimension_numbers = #tpu.dot_dimension_numbers<[1], [0], [0], [1], [0, 0, 1, 1], [], []>} : vector<8x8xf32>, vector<8x128xf32>, vector<8x128xf32> -> vector<8x128xf32>
    %91 = arith.addf %86, %90 : vector<8x128xf32>
    %c2_69 = arith.constant 2 : index
    %c0_70 = arith.constant 0 : index
    %c0_71 = arith.constant 0 : index
    %92 = vector.load %arg4[%c2_69, %c0_70, %c0_71] : memref<5x8x8xf32, #tpu.memory_space<vmem>>, vector<1x8x8xf32>
    %93 = vector.shape_cast %92 : vector<1x8x8xf32> to vector<8x8xf32>
    %c0_72 = arith.constant 0 : index
    %c2_73 = arith.constant 2 : index
    %94 = vector.load %arg7[%c0_72, %c2_73] : memref<8x132xf32, #tpu.memory_space<vmem>>, vector<8x128xf32>
    %cst_74 = arith.constant dense<0.000000e+00> : vector<8x128xf32>
    %95 = tpu.matmul %93, %94, %cst_74 {dimension_numbers = #tpu.dot_dimension_numbers<[1], [0], [0], [1], [0, 0, 1, 1], [], []>} : vector<8x8xf32>, vector<8x128xf32>, vector<8x128xf32> -> vector<8x128xf32>
    %96 = arith.addf %91, %95 : vector<8x128xf32>
    %c3_75 = arith.constant 3 : index
    %c0_76 = arith.constant 0 : index
    %c0_77 = arith.constant 0 : index
    %97 = vector.load %arg4[%c3_75, %c0_76, %c0_77] : memref<5x8x8xf32, #tpu.memory_space<vmem>>, vector<1x8x8xf32>
    %98 = vector.shape_cast %97 : vector<1x8x8xf32> to vector<8x8xf32>
    %c0_78 = arith.constant 0 : index
    %c3_79 = arith.constant 3 : index
    %99 = vector.load %arg7[%c0_78, %c3_79] : memref<8x132xf32, #tpu.memory_space<vmem>>, vector<8x128xf32>
    %cst_80 = arith.constant dense<0.000000e+00> : vector<8x128xf32>
    %100 = tpu.matmul %98, %99, %cst_80 {dimension_numbers = #tpu.dot_dimension_numbers<[1], [0], [0], [1], [0, 0, 1, 1], [], []>} : vector<8x8xf32>, vector<8x128xf32>, vector<8x128xf32> -> vector<8x128xf32>
    %101 = arith.addf %96, %100 : vector<8x128xf32>
    %c4_81 = arith.constant 4 : index
    %c0_82 = arith.constant 0 : index
    %c0_83 = arith.constant 0 : index
    %102 = vector.load %arg4[%c4_81, %c0_82, %c0_83] : memref<5x8x8xf32, #tpu.memory_space<vmem>>, vector<1x8x8xf32>
    %103 = vector.shape_cast %102 : vector<1x8x8xf32> to vector<8x8xf32>
    %c0_84 = arith.constant 0 : index
    %c4_85 = arith.constant 4 : index
    %104 = vector.load %arg7[%c0_84, %c4_85] : memref<8x132xf32, #tpu.memory_space<vmem>>, vector<8x128xf32>
    %cst_86 = arith.constant dense<0.000000e+00> : vector<8x128xf32>
    %105 = tpu.matmul %103, %104, %cst_86 {dimension_numbers = #tpu.dot_dimension_numbers<[1], [0], [0], [1], [0, 0, 1, 1], [], []>} : vector<8x8xf32>, vector<8x128xf32>, vector<8x128xf32> -> vector<8x128xf32>
    %106 = arith.addf %101, %105 : vector<8x128xf32>
    %c0_87 = arith.constant 0 : index
    %c0_88 = arith.constant 0 : index
    %107 = vector.load %arg5[%c0_87, %c0_88] : memref<8x1xf32, #tpu.memory_space<vmem>>, vector<8x1xf32>
    %108 = vector.broadcast %107 : vector<8x1xf32> to vector<8x128xf32>
    %109 = arith.addf %106, %108 : vector<8x128xf32>
    %110 = arith.addf %109, %5 : vector<8x128xf32>
    %c0_89 = arith.constant 0 : index
    %c0_90 = arith.constant 0 : index
    %c0_91 = arith.constant 0 : index
    %111 = vector.load %arg6[%c0_89, %c0_90, %c0_91] : memref<2x8x128xf32, #tpu.memory_space<vmem>>, vector<1x8x128xf32>
    %112 = vector.shape_cast %111 : vector<1x8x128xf32> to vector<8x128xf32>
    %113 = vector.shape_cast %110 : vector<8x128xf32> to vector<1x8x128xf32>
    tpu.vector_store %arg6[%c0_89, %c0_90, %c0_91], %113 {strides = array<i32>} : memref<2x8x128xf32, #tpu.memory_space<vmem>>, vector<1x8x128xf32>,
    %c1_92 = arith.constant 1 : index
    %c0_93 = arith.constant 0 : index
    %c0_94 = arith.constant 0 : index
    %114 = vector.load %arg1[%c1_92, %c0_93, %c0_94] : memref<2x8x128xf32, #tpu.memory_space<vmem>>, vector<1x8x128xf32>
    %115 = vector.shape_cast %114 : vector<1x8x128xf32> to vector<8x128xf32>
    %c0_95 = arith.constant 0 : index
    %c2_96 = arith.constant 2 : index
    %116 = vector.load %arg7[%c0_95, %c2_96] : memref<8x132xf32, #tpu.memory_space<vmem>>, vector<8x128xf32>
    tpu.vector_store %arg7[%c0_95, %c2_96], %115 {strides = array<i32>} : memref<8x132xf32, #tpu.memory_space<vmem>>, vector<8x128xf32>,
    %cst_97 = arith.constant 0.000000e+00 : f32
    %117 = vector.broadcast %cst_97 : f32 to vector<8x128xf32>
    %c0_98 = arith.constant 0 : index
    %c0_99 = arith.constant 0 : index
    %c0_100 = arith.constant 0 : index
    %118 = vector.load %arg2[%c0_98, %c0_99, %c0_100] : memref<5x8x8xf32, #tpu.memory_space<vmem>>, vector<1x8x8xf32>
    %119 = vector.shape_cast %118 : vector<1x8x8xf32> to vector<8x8xf32>
    %c0_101 = arith.constant 0 : index
    %c0_102 = arith.constant 0 : index
    %120 = vector.load %arg7[%c0_101, %c0_102] : memref<8x132xf32, #tpu.memory_space<vmem>>, vector<8x128xf32>
    %cst_103 = arith.constant dense<0.000000e+00> : vector<8x128xf32>
    %121 = tpu.matmul %119, %120, %cst_103 {dimension_numbers = #tpu.dot_dimension_numbers<[1], [0], [0], [1], [0, 0, 1, 1], [], []>} : vector<8x8xf32>, vector<8x128xf32>, vector<8x128xf32> -> vector<8x128xf32>
    %122 = arith.addf %117, %121 : vector<8x128xf32>
    %c1_104 = arith.constant 1 : index
    %c0_105 = arith.constant 0 : index
    %c0_106 = arith.constant 0 : index
    %123 = vector.load %arg2[%c1_104, %c0_105, %c0_106] : memref<5x8x8xf32, #tpu.memory_space<vmem>>, vector<1x8x8xf32>
    %124 = vector.shape_cast %123 : vector<1x8x8xf32> to vector<8x8xf32>
    %c0_107 = arith.constant 0 : index
    %c1_108 = arith.constant 1 : index
    %125 = vector.load %arg7[%c0_107, %c1_108] : memref<8x132xf32, #tpu.memory_space<vmem>>, vector<8x128xf32>
    %cst_109 = arith.constant dense<0.000000e+00> : vector<8x128xf32>
    %126 = tpu.matmul %124, %125, %cst_109 {dimension_numbers = #tpu.dot_dimension_numbers<[1], [0], [0], [1], [0, 0, 1, 1], [], []>} : vector<8x8xf32>, vector<8x128xf32>, vector<8x128xf32> -> vector<8x128xf32>
    %127 = arith.addf %122, %126 : vector<8x128xf32>
    %c2_110 = arith.constant 2 : index
    %c0_111 = arith.constant 0 : index
    %c0_112 = arith.constant 0 : index
    %128 = vector.load %arg2[%c2_110, %c0_111, %c0_112] : memref<5x8x8xf32, #tpu.memory_space<vmem>>, vector<1x8x8xf32>
    %129 = vector.shape_cast %128 : vector<1x8x8xf32> to vector<8x8xf32>
    %c0_113 = arith.constant 0 : index
    %c2_114 = arith.constant 2 : index
    %130 = vector.load %arg7[%c0_113, %c2_114] : memref<8x132xf32, #tpu.memory_space<vmem>>, vector<8x128xf32>
    %cst_115 = arith.constant dense<0.000000e+00> : vector<8x128xf32>
    %131 = tpu.matmul %129, %130, %cst_115 {dimension_numbers = #tpu.dot_dimension_numbers<[1], [0], [0], [1], [0, 0, 1, 1], [], []>} : vector<8x8xf32>, vector<8x128xf32>, vector<8x128xf32> -> vector<8x128xf32>
    %132 = arith.addf %127, %131 : vector<8x128xf32>
    %c3_116 = arith.constant 3 : index
    %c0_117 = arith.constant 0 : index
    %c0_118 = arith.constant 0 : index
    %133 = vector.load %arg2[%c3_116, %c0_117, %c0_118] : memref<5x8x8xf32, #tpu.memory_space<vmem>>, vector<1x8x8xf32>
    %134 = vector.shape_cast %133 : vector<1x8x8xf32> to vector<8x8xf32>
    %c0_119 = arith.constant 0 : index
    %c3_120 = arith.constant 3 : index
    %135 = vector.load %arg7[%c0_119, %c3_120] : memref<8x132xf32, #tpu.memory_space<vmem>>, vector<8x128xf32>
    %cst_121 = arith.constant dense<0.000000e+00> : vector<8x128xf32>
    %136 = tpu.matmul %134, %135, %cst_121 {dimension_numbers = #tpu.dot_dimension_numbers<[1], [0], [0], [1], [0, 0, 1, 1], [], []>} : vector<8x8xf32>, vector<8x128xf32>, vector<8x128xf32> -> vector<8x128xf32>
    %137 = arith.addf %132, %136 : vector<8x128xf32>
    %c4_122 = arith.constant 4 : index
    %c0_123 = arith.constant 0 : index
    %c0_124 = arith.constant 0 : index
    %138 = vector.load %arg2[%c4_122, %c0_123, %c0_124] : memref<5x8x8xf32, #tpu.memory_space<vmem>>, vector<1x8x8xf32>
    %139 = vector.shape_cast %138 : vector<1x8x8xf32> to vector<8x8xf32>
    %c0_125 = arith.constant 0 : index
    %c4_126 = arith.constant 4 : index
    %140 = vector.load %arg7[%c0_125, %c4_126] : memref<8x132xf32, #tpu.memory_space<vmem>>, vector<8x128xf32>
    %cst_127 = arith.constant dense<0.000000e+00> : vector<8x128xf32>
    %141 = tpu.matmul %139, %140, %cst_127 {dimension_numbers = #tpu.dot_dimension_numbers<[1], [0], [0], [1], [0, 0, 1, 1], [], []>} : vector<8x8xf32>, vector<8x128xf32>, vector<8x128xf32> -> vector<8x128xf32>
    %142 = arith.addf %137, %141 : vector<8x128xf32>
    %c0_128 = arith.constant 0 : index
    %c0_129 = arith.constant 0 : index
    %143 = vector.load %arg3[%c0_128, %c0_129] : memref<8x1xf32, #tpu.memory_space<vmem>>, vector<8x1xf32>
    %144 = vector.broadcast %143 : vector<8x1xf32> to vector<8x128xf32>
    %145 = arith.addf %142, %144 : vector<8x128xf32>
    %cst_130 = arith.constant 0.707106769 : f32
    %146 = vector.broadcast %cst_130 : f32 to vector<8x128xf32>
    %147 = arith.mulf %145, %146 : vector<8x128xf32>
    %cst_131 = arith.constant 0.000000e+00 : f32
    %148 = vector.broadcast %cst_131 : f32 to vector<8x128xf32>
    %149 = arith.cmpf oge, %147, %148 : vector<8x128xf32>
    %cst_132 = arith.constant 0.000000e+00 : f32
    %150 = vector.broadcast %cst_132 : f32 to vector<8x128xf32>
    %151 = arith.subf %150, %147 : vector<8x128xf32>
    %152 = arith.select %149, %147, %151 : vector<8x128xi1>, vector<8x128xf32>
    %cst_133 = arith.constant 0.327591091 : f32
    %153 = vector.broadcast %cst_133 : f32 to vector<8x128xf32>
    %154 = arith.mulf %153, %152 : vector<8x128xf32>
    %cst_134 = arith.constant 1.000000e+00 : f32
    %155 = vector.broadcast %cst_134 : f32 to vector<8x128xf32>
    %156 = arith.addf %155, %154 : vector<8x128xf32>
    %cst_135 = arith.constant 1.000000e+00 : f32
    %157 = vector.broadcast %cst_135 : f32 to vector<8x128xf32>
    %158 = arith.divf %157, %156 : vector<8x128xf32>
    %cst_136 = arith.constant 1.06140542 : f32
    %159 = vector.broadcast %cst_136 : f32 to vector<8x128xf32>
    %160 = arith.mulf %159, %158 : vector<8x128xf32>
    %cst_137 = arith.constant 1.45315206 : f32
    %161 = vector.broadcast %cst_137 : f32 to vector<8x128xf32>
    %162 = arith.subf %160, %161 : vector<8x128xf32>
    %163 = arith.mulf %162, %158 : vector<8x128xf32>
    %cst_138 = arith.constant 1.42141378 : f32
    %164 = vector.broadcast %cst_138 : f32 to vector<8x128xf32>
    %165 = arith.addf %163, %164 : vector<8x128xf32>
    %166 = arith.mulf %165, %158 : vector<8x128xf32>
    %cst_139 = arith.constant 0.284496725 : f32
    %167 = vector.broadcast %cst_139 : f32 to vector<8x128xf32>
    %168 = arith.subf %166, %167 : vector<8x128xf32>
    %169 = arith.mulf %168, %158 : vector<8x128xf32>
    %cst_140 = arith.constant 0.254829586 : f32
    %170 = vector.broadcast %cst_140 : f32 to vector<8x128xf32>
    %171 = arith.addf %169, %170 : vector<8x128xf32>
    %172 = arith.mulf %171, %158 : vector<8x128xf32>
    %cst_141 = arith.constant 0.000000e+00 : f32
    %173 = vector.broadcast %cst_141 : f32 to vector<8x128xf32>
    %174 = arith.subf %173, %152 : vector<8x128xf32>
    %175 = arith.mulf %174, %152 : vector<8x128xf32>
    %176 = math.exp %175 : vector<8x128xf32>
    %177 = arith.mulf %172, %176 : vector<8x128xf32>
    %cst_142 = arith.constant 1.000000e+00 : f32
    %178 = vector.broadcast %cst_142 : f32 to vector<8x128xf32>
    %179 = arith.subf %178, %177 : vector<8x128xf32>
    %cst_143 = arith.constant 0.000000e+00 : f32
    %180 = vector.broadcast %cst_143 : f32 to vector<8x128xf32>
    %181 = arith.cmpf oge, %147, %180 : vector<8x128xf32>
    %cst_144 = arith.constant 0.000000e+00 : f32
    %182 = vector.broadcast %cst_144 : f32 to vector<8x128xf32>
    %183 = arith.subf %182, %179 : vector<8x128xf32>
    %184 = arith.select %181, %179, %183 : vector<8x128xi1>, vector<8x128xf32>
    %cst_145 = arith.constant 5.000000e-01 : f32
    %185 = vector.broadcast %cst_145 : f32 to vector<8x128xf32>
    %186 = arith.mulf %185, %145 : vector<8x128xf32>
    %cst_146 = arith.constant 1.000000e+00 : f32
    %187 = vector.broadcast %cst_146 : f32 to vector<8x128xf32>
    %188 = arith.addf %187, %184 : vector<8x128xf32>
    %189 = arith.mulf %186, %188 : vector<8x128xf32>
    %c0_147 = arith.constant 0 : index
    %c2_148 = arith.constant 2 : index
    %190 = vector.load %arg7[%c0_147, %c2_148] : memref<8x132xf32, #tpu.memory_space<vmem>>, vector<8x128xf32>
    tpu.vector_store %arg7[%c0_147, %c2_148], %189 {strides = array<i32>} : memref<8x132xf32, #tpu.memory_space<vmem>>, vector<8x128xf32>,
    %cst_149 = arith.constant 0.000000e+00 : f32
    %191 = vector.broadcast %cst_149 : f32 to vector<8x128xf32>
    %c0_150 = arith.constant 0 : index
    %c0_151 = arith.constant 0 : index
    %c0_152 = arith.constant 0 : index
    %192 = vector.load %arg4[%c0_150, %c0_151, %c0_152] : memref<5x8x8xf32, #tpu.memory_space<vmem>>, vector<1x8x8xf32>
    %193 = vector.shape_cast %192 : vector<1x8x8xf32> to vector<8x8xf32>
    %c0_153 = arith.constant 0 : index
    %c0_154 = arith.constant 0 : index
    %194 = vector.load %arg7[%c0_153, %c0_154] : memref<8x132xf32, #tpu.memory_space<vmem>>, vector<8x128xf32>
    %cst_155 = arith.constant dense<0.000000e+00> : vector<8x128xf32>
    %195 = tpu.matmul %193, %194, %cst_155 {dimension_numbers = #tpu.dot_dimension_numbers<[1], [0], [0], [1], [0, 0, 1, 1], [], []>} : vector<8x8xf32>, vector<8x128xf32>, vector<8x128xf32> -> vector<8x128xf32>
    %196 = arith.addf %191, %195 : vector<8x128xf32>
    %c1_156 = arith.constant 1 : index
    %c0_157 = arith.constant 0 : index
    %c0_158 = arith.constant 0 : index
    %197 = vector.load %arg4[%c1_156, %c0_157, %c0_158] : memref<5x8x8xf32, #tpu.memory_space<vmem>>, vector<1x8x8xf32>
    %198 = vector.shape_cast %197 : vector<1x8x8xf32> to vector<8x8xf32>
    %c0_159 = arith.constant 0 : index
    %c1_160 = arith.constant 1 : index
    %199 = vector.load %arg7[%c0_159, %c1_160] : memref<8x132xf32, #tpu.memory_space<vmem>>, vector<8x128xf32>
    %cst_161 = arith.constant dense<0.000000e+00> : vector<8x128xf32>
    %200 = tpu.matmul %198, %199, %cst_161 {dimension_numbers = #tpu.dot_dimension_numbers<[1], [0], [0], [1], [0, 0, 1, 1], [], []>} : vector<8x8xf32>, vector<8x128xf32>, vector<8x128xf32> -> vector<8x128xf32>
    %201 = arith.addf %196, %200 : vector<8x128xf32>
    %c2_162 = arith.constant 2 : index
    %c0_163 = arith.constant 0 : index
    %c0_164 = arith.constant 0 : index
    %202 = vector.load %arg4[%c2_162, %c0_163, %c0_164] : memref<5x8x8xf32, #tpu.memory_space<vmem>>, vector<1x8x8xf32>
    %203 = vector.shape_cast %202 : vector<1x8x8xf32> to vector<8x8xf32>
    %c0_165 = arith.constant 0 : index
    %c2_166 = arith.constant 2 : index
    %204 = vector.load %arg7[%c0_165, %c2_166] : memref<8x132xf32, #tpu.memory_space<vmem>>, vector<8x128xf32>
    %cst_167 = arith.constant dense<0.000000e+00> : vector<8x128xf32>
    %205 = tpu.matmul %203, %204, %cst_167 {dimension_numbers = #tpu.dot_dimension_numbers<[1], [0], [0], [1], [0, 0, 1, 1], [], []>} : vector<8x8xf32>, vector<8x128xf32>, vector<8x128xf32> -> vector<8x128xf32>
    %206 = arith.addf %201, %205 : vector<8x128xf32>
    %c3_168 = arith.constant 3 : index
    %c0_169 = arith.constant 0 : index
    %c0_170 = arith.constant 0 : index
    %207 = vector.load %arg4[%c3_168, %c0_169, %c0_170] : memref<5x8x8xf32, #tpu.memory_space<vmem>>, vector<1x8x8xf32>
    %208 = vector.shape_cast %207 : vector<1x8x8xf32> to vector<8x8xf32>
    %c0_171 = arith.constant 0 : index
    %c3_172 = arith.constant 3 : index
    %209 = vector.load %arg7[%c0_171, %c3_172] : memref<8x132xf32, #tpu.memory_space<vmem>>, vector<8x128xf32>
    %cst_173 = arith.constant dense<0.000000e+00> : vector<8x128xf32>
    %210 = tpu.matmul %208, %209, %cst_173 {dimension_numbers = #tpu.dot_dimension_numbers<[1], [0], [0], [1], [0, 0, 1, 1], [], []>} : vector<8x8xf32>, vector<8x128xf32>, vector<8x128xf32> -> vector<8x128xf32>
    %211 = arith.addf %206, %210 : vector<8x128xf32>
    %c4_174 = arith.constant 4 : index
    %c0_175 = arith.constant 0 : index
    %c0_176 = arith.constant 0 : index
    %212 = vector.load %arg4[%c4_174, %c0_175, %c0_176] : memref<5x8x8xf32, #tpu.memory_space<vmem>>, vector<1x8x8xf32>
    %213 = vector.shape_cast %212 : vector<1x8x8xf32> to vector<8x8xf32>
    %c0_177 = arith.constant 0 : index
    %c4_178 = arith.constant 4 : index
    %214 = vector.load %arg7[%c0_177, %c4_178] : memref<8x132xf32, #tpu.memory_space<vmem>>, vector<8x128xf32>
    %cst_179 = arith.constant dense<0.000000e+00> : vector<8x128xf32>
    %215 = tpu.matmul %213, %214, %cst_179 {dimension_numbers = #tpu.dot_dimension_numbers<[1], [0], [0], [1], [0, 0, 1, 1], [], []>} : vector<8x8xf32>, vector<8x128xf32>, vector<8x128xf32> -> vector<8x128xf32>
    %216 = arith.addf %211, %215 : vector<8x128xf32>
    %c0_180 = arith.constant 0 : index
    %c0_181 = arith.constant 0 : index
    %217 = vector.load %arg5[%c0_180, %c0_181] : memref<8x1xf32, #tpu.memory_space<vmem>>, vector<8x1xf32>
    %218 = vector.broadcast %217 : vector<8x1xf32> to vector<8x128xf32>
    %219 = arith.addf %216, %218 : vector<8x128xf32>
    %220 = arith.addf %219, %115 : vector<8x128xf32>
    %c1_182 = arith.constant 1 : index
    %c0_183 = arith.constant 0 : index
    %c0_184 = arith.constant 0 : index
    %221 = vector.load %arg6[%c1_182, %c0_183, %c0_184] : memref<2x8x128xf32, #tpu.memory_space<vmem>>, vector<1x8x128xf32>
    %222 = vector.shape_cast %221 : vector<1x8x128xf32> to vector<8x128xf32>
    %223 = vector.shape_cast %220 : vector<8x128xf32> to vector<1x8x128xf32>
    tpu.vector_store %arg6[%c1_182, %c0_183, %c0_184], %223 {strides = array<i32>} : memref<2x8x128xf32, #tpu.memory_space<vmem>>, vector<1x8x128xf32>,
    return
  }
  func.func @transform_0(%arg0: i32) -> (i32, i32, i32) {
    %c0_i32 = arith.constant 0 : i32
    %c0_i32_0 = arith.constant 0 : i32
    %c0_i32_1 = arith.constant 0 : i32
    return %arg0, %c0_i32, %c0_i32_0 : i32, i32, i32
  }
  func.func @transform_1(%arg0: i32) -> (i32, i32, i32) {
    %c0_i32 = arith.constant 0 : i32
    %c0_i32_0 = arith.constant 0 : i32
    %c0_i32_1 = arith.constant 0 : i32
    %c0_i32_2 = arith.constant 0 : i32
    return %c0_i32, %c0_i32_0, %c0_i32_1 : i32, i32, i32
  }
  func.func @transform_2(%arg0: i32) -> (i32, i32) {
    %c0_i32 = arith.constant 0 : i32
    %c0_i32_0 = arith.constant 0 : i32
    %c0_i32_1 = arith.constant 0 : i32
    return %c0_i32, %c0_i32_0 : i32, i32
  }
  func.func @transform_3(%arg0: i32) -> (i32, i32, i32) {
    %c0_i32 = arith.constant 0 : i32
    %c0_i32_0 = arith.constant 0 : i32
    %c0_i32_1 = arith.constant 0 : i32
    %c0_i32_2 = arith.constant 0 : i32
    return %c0_i32, %c0_i32_0, %c0_i32_1 : i32, i32, i32
  }
  func.func @transform_4(%arg0: i32) -> (i32, i32) {
    %c0_i32 = arith.constant 0 : i32
    %c0_i32_0 = arith.constant 0 : i32
    %c0_i32_1 = arith.constant 0 : i32
    return %c0_i32, %c0_i32_0 : i32, i32
  }
  func.func @transform_5(%arg0: i32) -> (i32, i32, i32) {
    %c0_i32 = arith.constant 0 : i32
    %c0_i32_0 = arith.constant 0 : i32
    %c0_i32_1 = arith.constant 0 : i32
    return %arg0, %c0_i32, %c0_i32_0 : i32, i32, i32
  }
}

</mosaic_0001>

<bundles_post_ra>
// kernel: tpu_custom_call.1
= control target key start
LH: loop header
LB: loop body
LE: loop exit
PB: predicated region body
PF: predicated region fallthrough
CT: control target
= control target key end

     0   :  { %10 = vsyncpa [#allocation4], 0  ;;  %s2334_s0 = inlined_call_operand.vmem [shape: f32[2,8,128], index: 0, kind: input, shape index: {}]   ;;  %s2335_s1 = inlined_call_operand.hbm [shape: f32[5,8,8], index: 1, kind: input, shape index: {}]   ;;  %s2336_s2 = inlined_call_operand.vmem [shape: f32[8,1], index: 2, kind: input, shape index: {}]   ;;  %s2337_s3 = inlined_call_operand.hbm [shape: f32[5,8,8], index: 3, kind: input, shape index: {}]   ;;  %s2338_s4 = inlined_call_operand.vmem [shape: f32[8,1], index: 4, kind: input, shape index: {}]   ;;  %s2339_s5 = inlined_call_operand.hbm [shape: f32[2,8,128], index: 5, kind: output, shape index: {}]  }
   0x1   :  { %11 = vsyncpa [#allocation7], 0 }
   0x2   :  { %12 = vsyncpa [#allocation5], 0  ;;  %s2059_s18 = smov [#allocation3]  }
   0x3   :  { %s20_s19 = sshll.u32 %s2059_s18, 4  ;;  %s21_s19 = int_to_ptr.vmem [resolvable:$true] %s20_s19 }
   0x4   :  { %s2001_s20 = scalar_lea.vmem %s21_s19, 640  ;;  %p2006_p1 = scmp.lt.s32.totalorder %s21_s19, %s21_s19 }
   0x5   :  { %p2002_p0 = scmp.ne.s32.totalorder %s21_s19, %s2001_s20  ;;  %p2007_p2 = scmp.lt.s32.totalorder %s2001_s20, %s2001_s20 }
   0x7   :  { %p2008_p3 = por %p2007_p2, %p2006_p1 }
   0x9   :  { %p2009_p4 = pnand %p2008_p3, %p2002_p0 }
   0xb   :  { %2012 = shalt.err (!%p2009_p4)
}
   0xc   :  { %s2060_s21 = smov 128   ;;  %s2061_s22 = smov 8  }
   0xd   :  { %26 = dma.hbm_to_vmem [thread:$0]  %s2335_s1, 640, %s21_s19, [#allocation4], %s2060_s21, %s2060_s21, %s2061_s22  }
   0xe   :  { %s2062_s25 = smov [#allocation6]  }
   0xf   :  { %s34_s26 = sshll.u32 %s2062_s25, 4  ;;  %s35_s26 = int_to_ptr.vmem [resolvable:$true] %s34_s26 }
  0x10   :  { %s2021_s27 = scalar_lea.vmem %s35_s26, 640  ;;  %p2026_p6 = scmp.lt.s32.totalorder %s35_s26, %s35_s26 }
  0x11   :  { %p2022_p5 = scmp.ne.s32.totalorder %s35_s26, %s2021_s27  ;;  %p2027_p7 = scmp.lt.s32.totalorder %s2021_s27, %s2021_s27 }
  0x13   :  { %p2028_p8 = por %p2027_p7, %p2026_p6 }
  0x15   :  { %p2029_p9 = pnand %p2028_p8, %p2022_p5 }
  0x17   :  { %2032 = shalt.err (!%p2029_p9)
}
  0x18   :  { %40 = dma.hbm_to_vmem [thread:$0]  %s2337_s3, 640, %s35_s26, [#allocation7], %s2060_s21, %s2060_s21, %s2061_s22  }
  0x19   :  { %2053 = dma.done.wait [#allocation4], 640  }
  0x1a   :  { %2054 = vsyncadd [#allocation4], 4294966656 }
  0x1b   :  { %2055 = dma.done.wait [#allocation7], 640  }
  0x1c   :  { %2056 = vsyncadd [#allocation7], 4294966656  ;;  %vm49_vm0 = vcmask 15360   ;;  %vm51_vm1 = vcmask 31760   ;;  %v2063_v0 = vmov 0.0   ;;  %v2122_v1 = vld [vmem:[%s2334_s0] sm:$0xff] }
  0x1d   :  { %50 = vst.msk [vmem:[#allocation2] sm:$0xff] %vm49_vm0, %v2063_v0  ;;  %1875 = vmatprep.subr.mxu1 %v2063_v0  ;;  %1870 = vmatprep.subr.mxu0 %v2063_v0  ;;  %s2064_s3 = smov 2   ;;  %vm58_vm2 = vcmask 1047568   ;;  %vm2065_vm3 = vmmov 0   ;;  %v2132_v5 = vld [vmem:[#allocation3] sm:$0xff]  ;;  %s2066_s6 = smov 127  }
  0x1e   :  { %52 = vst.msk [vmem:[#allocation2 + $0x8] sm:$0xff] %vm51_vm1, %v2063_v0  ;;  %55 = vrot.lane.b32.xlu0 %v2122_v1, %s2064_s3  ;;  %1872 = vmatprep.mubr.msk.f32.mxu0 %vm2065_vm3, %v2063_v0  ;;  %vm75_vm4 = vcmask 64512   ;;  %v2067_v6 = vmov 0   ;;  %s2068_s7 = smov 126   ;;  %s2069_s8 = smov 125   ;;  %v2150_v7 = vld [vmem:[%s2336_s2] sm:$0xff] }
  0x1f   :  { %1877 = vmatprep.mubr.msk.f32.mxu1 %vm2065_vm3, %v2063_v0  ;;  %1983 = vset.pattern.permute.xlu1 %v2067_v6  ;;  %s2070_s9 = smov 124   ;;  %vm72_vm5 = vcmask 1039360   ;;  %v2153_v10 = vld [vmem:[#allocation3 + $0x8] sm:$0xff]  ;;  %vm228_vm6 = vcmask 1031168   ;;  %v2161_v14 = vld [vmem:[#allocation3 + $0x10] sm:$0xff]  ;;  %vm311_vm7 = vcmask 1022976  }
  0x20   :  { %1984 = vset.pattern.permute.xlu0 %v2067_v6  ;;  %v2167_v18 = vld [vmem:[#allocation3 + $0x18] sm:$0xff]  ;;  %vm394_vm8 = vcmask 1014784   ;;  %v2175_v22 = vld [vmem:[#allocation3 + $0x20] sm:$0xff] }
  0x21   :  { %v2188_v26 = vld [vmem:[%s2334_s0 + $0x8] sm:$0xff] }
  0x90   :  { %v56_v2 = vpop.permute.xlu0 %55 }
  0x91   :  { %59 = vst.msk [vmem:[#allocation2] sm:$0xff] %vm58_vm2, %v56_v2 }
  0x92   :  { %60 = vst.msk [vmem:[#allocation2 + $0x8] sm:$0xff] %vm49_vm0, %v56_v2 }
  0x98   :  { %v62_v4 = vld [vmem:[#allocation2] sm:$0xff] }
  0x99   :  { %v65_v3 = vld [vmem:[#allocation2 + $0x8] sm:$0xff]  ;;  %68 = vrot.lane.b32.xlu0 %v62_v4, %s2066_s6  ;;  %1876 = vmatpush3.msra.mxu1 %v62_v4 }
  0x9a   :  { %70 = vrot.lane.b32.xlu1 %v65_v3, %s2066_s6  ;;  %1878 = vmatmul.mubr.msk.f32.vlgmr.msra.gmra.mxu1 %vm75_vm4, %v2132_v5 }
  0x9b   :  { %1885 = vmatprep.subr.mxu1 %v2063_v0  ;;  %1887 = vmatprep.mubr.msk.f32.mxu1 %vm2065_vm3, %v2063_v0 }
  0x9d   :  { %226 = vrot.lane.b32.xlu0 %v65_v3, %s2068_s7 }
  0x9e   :  { %224 = vrot.lane.b32.xlu1 %v62_v4, %s2068_s7 }
  0xa1   :  { %309 = vrot.lane.b32.xlu0 %v65_v3, %s2069_s8 }
  0xa2   :  { %307 = vrot.lane.b32.xlu1 %v62_v4, %s2069_s8 }
  0xa5   :  { %392 = vrot.lane.b32.xlu0 %v65_v3, %s2070_s9 }
  0xa6   :  { %390 = vrot.lane.b32.xlu1 %v62_v4, %s2070_s9 }
  0xaa   :  { %474 = vperm.xlu1 %1983, %v2150_v7  }
  0xae   :  { %929 = vrot.lane.b32.xlu1 %v2188_v26, %s2064_s3 }
 0x10b   :  { %v69_v9 = vpop.permute.xlu0 %68 }
 0x10c   :  { %v71_v8 = vpop.permute.xlu1 %70 }
 0x10d   :  { %v73_v11 = vsel %vm72_vm5, %v69_v9, %v71_v8 }
 0x10e   :  { %1871 = vmatpush3.msra.mxu0 %v73_v11 }
 0x10f   :  { %1873 = vmatmul.mubr.msk.f32.vlgmr.msra.gmra.mxu0 %vm75_vm4, %v2153_v10  ;;  %1880 = vmatprep.subr.mxu0 %v2063_v0  ;;  %v227_v13 = vpop.permute.xlu0 %226 }
 0x110   :  { %v225_v12 = vpop.permute.xlu1 %224  ;;  %1882 = vmatprep.mubr.msk.f32.mxu0 %vm2065_vm3, %v2063_v0 }
 0x111   :  { %v229_v15 = vsel %vm228_vm6, %v225_v12, %v227_v13  ;;  %v2197_v12 = vld [vmem:[#allocation6] sm:$0xff] }
 0x112   :  { %1881 = vmatpush3.msra.mxu0 %v229_v15 }
 0x113   :  { %1883 = vmatmul.mubr.msk.f32.vlgmr.msra.gmra.mxu0 %vm75_vm4, %v2161_v14  ;;  %1890 = vmatprep.subr.mxu0 %v2063_v0  ;;  %v310_v17 = vpop.permute.xlu0 %309 }
 0x114   :  { %v308_v16 = vpop.permute.xlu1 %307  ;;  %1892 = vmatprep.mubr.msk.f32.mxu0 %vm2065_vm3, %v2063_v0 }
 0x115   :  { %v312_v19 = vsel %vm311_vm7, %v308_v16, %v310_v17 }
 0x116   :  { %1886 = vmatpush3.msra.mxu1 %v312_v19  ;;  %v2223_v19 = vld [vmem:[#allocation6 + $0x8] sm:$0xff] }
 0x117   :  { %1888 = vmatmul.mubr.msk.f32.vlgmr.msra.gmra.mxu1 %vm75_vm4, %v2167_v18  ;;  %1895 = vmatprep.subr.mxu1 %v2063_v0  ;;  %v393_v21 = vpop.permute.xlu0 %392 }
 0x118   :  { %v391_v20 = vpop.permute.xlu1 %390  ;;  %1897 = vmatprep.mubr.msk.f32.mxu1 %vm2065_vm3, %v2063_v0 }
 0x119   :  { %v395_v23 = vsel %vm394_vm8, %v391_v20, %v393_v21 }
 0x11a   :  { %1891 = vmatpush3.msra.mxu0 %v395_v23 }
 0x11b   :  { %1893 = vmatmul.mubr.msk.f32.vlgmr.msra.gmra.mxu0 %vm75_vm4, %v2175_v22  ;;  %1900 = vmatprep.subr.mxu0 %v2063_v0 }
 0x11c   :  { %1902 = vmatprep.mubr.msk.f32.mxu0 %vm2065_vm3, %v2063_v0 }
 0x125   :  { %v475_v37 = vpop.permute.xlu1 %474 }
 0x129   :  { %v930_v8 = vpop.permute.xlu1 %929 }
 0x15a   :  { %v218_v24 = vpop.f32.mrf.mxu1 }
 0x15c   :  { %v1879_v25 = vpop.f32.mrf.mxu1 }
 0x1cf   :  { %v145_v27 = vpop.f32.mrf.mxu0 }
 0x1d0   :  { %v219_v29 = vadd.f32 %v218_v24, %v145_v27  ;;  %v2231_v24 = vld [vmem:[#allocation6 + $0x10] sm:$0xff] }
 0x1d1   :  { %v1874_v28 = vpop.f32.mrf.mxu0 }
 0x1d2   :  { %v2239_v28 = vld [vmem:[#allocation6 + $0x18] sm:$0xff] }
 0x1d3   :  { %v300_v30 = vpop.f32.mrf.mxu0 }
 0x1d4   :  { %v304_v32 = vadd.f32 %v300_v30, %v219_v29 }
 0x1d5   :  { %v1884_v31 = vpop.f32.mrf.mxu0 }
 0x1d7   :  { %v383_v33 = vpop.f32.mrf.mxu1 }
 0x1d8   :  { %v387_v35 = vadd.f32 %v383_v33, %v304_v32  ;;  %v2245_v32 = vld [vmem:[#allocation6 + $0x20] sm:$0xff] }
 0x1d9   :  { %v1889_v34 = vpop.f32.mrf.mxu1 }
 0x1db   :  { %v466_v36 = vpop.f32.mrf.mxu0 }
 0x1dc   :  { %v470_v38 = vadd.f32 %v466_v36, %v387_v35 }
 0x1dd   :  { %v1894_v39 = vpop.f32.mrf.mxu0 }
 0x1de   :  { %v477_v40 = vadd.f32 %v475_v37, %v470_v38 }
 0x1e0   :  { %v478_v41 = vmul.f32 0.70710677, %v477_v40  ;;  %v503_v2 = vmul.f32 0.5, %v477_v40 }
 0x1e2   :  { %vm479_vm9 = vcmp.ge.f32.partialorder %v478_v41, 0.0  ;;  %v480_v42 = vsub.f32 0.0, %v478_v41 }
 0x1e4   :  { %v481_v43 = vsel %vm479_vm9, %v478_v41, %v480_v42 }
 0x1e5   :  { %v482_v44 = vmul.f32 0.3275911, %v481_v43  ;;  %v495_v46 = vsub.f32 0.0, %v481_v43 }
 0x1e7   :  { %v483_v45 = vadd.f32 1.0, %v482_v44  ;;  %v496_v47 = vmul.f32 %v495_v46, %v481_v43 }
 0x1e9   :  { %1985 = vrcp.f32 %v483_v45  ;;  %v497_v49 = vmul.f32 1.442695, %v496_v47 }
 0x1eb   :  { %1987 = vpow2.f32 %v497_v49 }
 0x1f6   :  { %v1986_v48 = vpop.eup %1985 }
 0x1f7   :  { %v486_v50 = vmul.f32 1.0614054, %v1986_v48 }
 0x1f8   :  { %v1988_v59 = vpop.eup %1987 }
 0x1f9   :  { %v1810_v51 = vadd.f32 -1.4531521, %v486_v50 }
 0x1fb   :  { %v488_v52 = vmul.f32 %v1986_v48, %v1810_v51 }
 0x1fd   :  { %v489_v53 = vadd.f32 1.4214138, %v488_v52 }
 0x1ff   :  { %v490_v54 = vmul.f32 %v1986_v48, %v489_v53 }
 0x201   :  { %v1811_v55 = vadd.f32 -0.28449672, %v490_v54 }
 0x203   :  { %v492_v56 = vmul.f32 %v1986_v48, %v1811_v55 }
 0x205   :  { %v493_v57 = vadd.f32 0.2548296, %v492_v56 }
 0x207   :  { %v494_v58 = vmul.f32 %v1986_v48, %v493_v57 }
 0x209   :  { %v499_v60 = vmul.f32 %v1988_v59, %v494_v58 }
 0x20b   :  { %v500_v61 = vsub.f32 1.0, %v499_v60 }
 0x20d   :  { %v501_v62 = vsub.f32 0.0, %v500_v61 }
 0x20f   :  { %v502_v63 = vsel %vm479_vm9, %v500_v61, %v501_v62 }
 0x210   :  { %v504_v3 = vadd.f32 1.0, %v502_v63 }
 0x212   :  { %v505_v4 = vmul.f32 %v504_v3, %v503_v2 }
 0x214   :  { %507 = vrot.lane.b32.xlu0 %v505_v4, %s2064_s3 }
 0x286   :  { %v508_v6 = vpop.permute.xlu0 %507 }
 0x287   :  { %510 = vst.msk [vmem:[#allocation2] sm:$0xff] %vm58_vm2, %v508_v6 }
 0x288   :  { %511 = vst.msk [vmem:[#allocation2 + $0x8] sm:$0xff] %vm49_vm0, %v508_v6 }
 0x28e   :  { %v513_v11 = vld [vmem:[#allocation2] sm:$0xff] }
 0x28f   :  { %v516_v9 = vld [vmem:[#allocation2 + $0x8] sm:$0xff]  ;;  %519 = vrot.lane.b32.xlu0 %v513_v11, %s2066_s6  ;;  %932 = vst.msk [vmem:[#allocation2] sm:$0xff] %vm58_vm2, %v930_v8  ;;  %1901 = vmatpush3.msra.mxu0 %v513_v11 }
 0x290   :  { %521 = vrot.lane.b32.xlu1 %v516_v9, %s2066_s6  ;;  %933 = vst.msk [vmem:[#allocation2 + $0x8] sm:$0xff] %vm49_vm0, %v930_v8  ;;  %1910 = vmatprep.subr.mxu0 %v2063_v0 }
 0x291   :  { %1903 = vmatmul.mubr.msk.f32.vlgmr.msra.gmra.mxu0 %vm75_vm4, %v2197_v12 }
 0x292   :  { %1912 = vmatprep.mubr.msk.f32.mxu0 %vm2065_vm3, %v2063_v0 }
 0x293   :  { %673 = vrot.lane.b32.xlu0 %v513_v11, %s2068_s7 }
 0x294   :  { %675 = vrot.lane.b32.xlu1 %v516_v9, %s2068_s7 }
 0x296   :  { %v935_v15 = vld [vmem:[#allocation2] sm:$0xff] }
 0x297   :  { %755 = vrot.lane.b32.xlu0 %v513_v11, %s2069_s8  ;;  %v937_v13 = vld [vmem:[#allocation2 + $0x8] sm:$0xff] }
 0x298   :  { %757 = vrot.lane.b32.xlu1 %v516_v9, %s2069_s8 }
 0x29b   :  { %837 = vrot.lane.b32.xlu0 %v513_v11, %s2070_s9 }
 0x29c   :  { %839 = vrot.lane.b32.xlu1 %v516_v9, %s2070_s9 }
 0x29f   :  { %940 = vrot.lane.b32.xlu0 %v935_v15, %s2066_s6 }
 0x2a0   :  { %942 = vrot.lane.b32.xlu1 %v937_v13, %s2066_s6 }
 0x2a3   :  { %1093 = vrot.lane.b32.xlu0 %v935_v15, %s2068_s7 }
 0x2a4   :  { %1095 = vrot.lane.b32.xlu1 %v937_v13, %s2068_s7 }
 0x2a7   :  { %1174 = vrot.lane.b32.xlu0 %v935_v15, %s2069_s8 }
 0x2a8   :  { %1176 = vrot.lane.b32.xlu1 %v937_v13, %s2069_s8 }
 0x2ab   :  { %1255 = vrot.lane.b32.xlu0 %v935_v15, %s2070_s9 }
 0x2ac   :  { %1257 = vrot.lane.b32.xlu1 %v937_v13, %s2070_s9 }
 0x2af   :  { %1338 = vperm.xlu0 %1984, %v2150_v7  }
 0x301   :  { %v520_v17 = vpop.permute.xlu0 %519 }
 0x302   :  { %v522_v16 = vpop.permute.xlu1 %521 }
 0x303   :  { %v523_v20 = vsel %vm72_vm5, %v520_v17, %v522_v16 }
 0x304   :  { %1896 = vmatpush3.msra.mxu1 %v523_v20 }
 0x305   :  { %1905 = vmatprep.subr.mxu1 %v2063_v0  ;;  %1898 = vmatmul.mubr.msk.f32.vlgmr.msra.gmra.mxu1 %vm75_vm4, %v2223_v19  ;;  %v674_v23 = vpop.permute.xlu0 %673 }
 0x306   :  { %v676_v21 = vpop.permute.xlu1 %675  ;;  %1907 = vmatprep.mubr.msk.f32.mxu1 %vm2065_vm3, %v2063_v0 }
 0x307   :  { %v677_v7 = vsel %vm228_vm6, %v674_v23, %v676_v21 }
 0x308   :  { %1906 = vmatpush3.msra.mxu1 %v677_v7 }
 0x309   :  { %1908 = vmatmul.mubr.msk.f32.vlgmr.msra.gmra.mxu1 %vm75_vm4, %v2231_v24  ;;  %1915 = vmatprep.subr.mxu1 %v2063_v0  ;;  %v756_v27 = vpop.permute.xlu0 %755 }
 0x30a   :  { %v758_v25 = vpop.permute.xlu1 %757  ;;  %1917 = vmatprep.mubr.msk.f32.mxu1 %vm2065_vm3, %v2063_v0 }
 0x30b   :  { %v759_v29 = vsel %vm311_vm7, %v756_v27, %v758_v25 }
 0x30c   :  { %1911 = vmatpush3.msra.mxu0 %v759_v29 }
 0x30d   :  { %1913 = vmatmul.mubr.msk.f32.vlgmr.msra.gmra.mxu0 %vm75_vm4, %v2239_v28  ;;  %1920 = vmatprep.subr.mxu0 %v2063_v0  ;;  %v838_v31 = vpop.permute.xlu0 %837 }
 0x30e   :  { %v840_v30 = vpop.permute.xlu1 %839  ;;  %1922 = vmatprep.mubr.msk.f32.mxu0 %vm2065_vm3, %v2063_v0 }
 0x30f   :  { %v841_v33 = vsel %vm394_vm8, %v838_v31, %v840_v30 }
 0x310   :  { %1916 = vmatpush3.msra.mxu1 %v841_v33 }
 0x311   :  { %1925 = vmatprep.subr.mxu1 %v2063_v0  ;;  %1918 = vmatmul.mubr.msk.f32.vlgmr.msra.gmra.mxu1 %vm75_vm4, %v2245_v32  ;;  %v941_v35 = vpop.permute.xlu0 %940 }
 0x312   :  { %v943_v34 = vpop.permute.xlu1 %942  ;;  %1926 = vmatpush3.msra.mxu1 %v935_v15  ;;  %1927 = vmatprep.mubr.msk.f32.mxu1 %vm2065_vm3, %v2063_v0 }
 0x313   :  { %v944_v36 = vsel %vm72_vm5, %v941_v35, %v943_v34  ;;  %1935 = vmatprep.subr.mxu1 %v2063_v0 }
 0x314   :  { %1921 = vmatpush3.msra.mxu0 %v944_v36 }
 0x315   :  { %1923 = vmatmul.mubr.msk.f32.vlgmr.msra.gmra.mxu0 %vm75_vm4, %v2153_v10  ;;  %1930 = vmatprep.subr.mxu0 %v2063_v0  ;;  %v1094_v38 = vpop.permute.xlu0 %1093 }
 0x316   :  { %v1096_v37 = vpop.permute.xlu1 %1095  ;;  %1928 = vmatmul.mubr.msk.f32.vlgmr.msra.gmra.mxu1 %vm75_vm4, %v2132_v5  ;;  %1932 = vmatprep.mubr.msk.f32.mxu0 %vm2065_vm3, %v2063_v0 }
 0x317   :  { %v1097_v39 = vsel %vm228_vm6, %v1094_v38, %v1096_v37  ;;  %1937 = vmatprep.mubr.msk.f32.mxu1 %vm2065_vm3, %v2063_v0 }
 0x318   :  { %1931 = vmatpush3.msra.mxu0 %v1097_v39 }
 0x319   :  { %1933 = vmatmul.mubr.msk.f32.vlgmr.msra.gmra.mxu0 %vm75_vm4, %v2161_v14  ;;  %1940 = vmatprep.subr.mxu0 %v2063_v0  ;;  %v1175_v40 = vpop.permute.xlu0 %1174 }
 0x31a   :  { %v1177_v10 = vpop.permute.xlu1 %1176  ;;  %1942 = vmatprep.mubr.msk.f32.mxu0 %vm2065_vm3, %v2063_v0 }
 0x31b   :  { %v1178_v5 = vsel %vm311_vm7, %v1175_v40, %v1177_v10 }
 0x31c   :  { %1936 = vmatpush3.msra.mxu1 %v1178_v5 }
 0x31d   :  { %1938 = vmatmul.mubr.msk.f32.vlgmr.msra.gmra.mxu1 %vm75_vm4, %v2167_v18  ;;  %1945 = vmatprep.subr.mxu1 %v2063_v0  ;;  %v1256_v42 = vpop.permute.xlu0 %1255 }
 0x31e   :  { %v1258_v41 = vpop.permute.xlu1 %1257  ;;  %1947 = vmatprep.mubr.msk.f32.mxu1 %vm2065_vm3, %v2063_v0 }
 0x31f   :  { %v1259_v14 = vsel %vm394_vm8, %v1256_v42, %v1258_v41 }
 0x320   :  { %1941 = vmatpush3.msra.mxu0 %v1259_v14 }
 0x321   :  { %1943 = vmatmul.mubr.msk.f32.vlgmr.msra.gmra.mxu0 %vm75_vm4, %v2175_v22  ;;  %1950 = vmatprep.subr.mxu0 %v2063_v0 }
 0x322   :  { %1952 = vmatprep.mubr.msk.f32.mxu0 %vm2065_vm3, %v2063_v0 }
 0x32a   :  { %v1339_v6 = vpop.permute.xlu0 %1338 }
 0x351   :  { %v667_v43 = vpop.f32.mrf.mxu0 }
 0x353   :  { %v1904_v18 = vpop.f32.mrf.mxu0 }
 0x3c5   :  { %v594_v44 = vpop.f32.mrf.mxu1 }
 0x3c6   :  { %v668_v45 = vadd.f32 %v667_v43, %v594_v44 }
 0x3c7   :  { %v1899_v46 = vpop.f32.mrf.mxu1 }
 0x3c9   :  { %v748_v47 = vpop.f32.mrf.mxu1 }
 0x3ca   :  { %v752_v48 = vadd.f32 %v748_v47, %v668_v45 }
 0x3cb   :  { %v1909_v49 = vpop.f32.mrf.mxu1 }
 0x3cd   :  { %v830_v50 = vpop.f32.mrf.mxu0 }
 0x3ce   :  { %v834_v51 = vadd.f32 %v830_v50, %v752_v48 }
 0x3cf   :  { %v1914_v52 = vpop.f32.mrf.mxu0 }
 0x3d1   :  { %v912_v53 = vpop.f32.mrf.mxu1 }
 0x3d2   :  { %v2284_v54 = vadd.f32 %v912_v53, %v834_v51 }
 0x3d3   :  { %v1919_v22 = vpop.f32.mrf.mxu1 }
 0x3d5   :  { %v1015_v55 = vpop.f32.mrf.mxu0 }
 0x3d6   :  { %v1088_v56 = vpop.f32.mrf.mxu1 }
 0x3d7   :  { %v1924_v57 = vpop.f32.mrf.mxu0  ;;  %v1089_v58 = vadd.f32 %v1088_v56, %v1015_v55 }
 0x3d8   :  { %v1929_v59 = vpop.f32.mrf.mxu1 }
 0x3d9   :  { %v1168_v60 = vpop.f32.mrf.mxu0 }
 0x3da   :  { %v1172_v62 = vadd.f32 %v1168_v60, %v1089_v58 }
 0x3db   :  { %v1934_v61 = vpop.f32.mrf.mxu0 }
 0x3dd   :  { %v1249_v63 = vpop.f32.mrf.mxu1 }
 0x3de   :  { %v1253_v3 = vadd.f32 %v1249_v63, %v1172_v62 }
 0x3df   :  { %v1939_v2 = vpop.f32.mrf.mxu1 }
 0x3e1   :  { %v1330_v4 = vpop.f32.mrf.mxu0 }
 0x3e2   :  { %v1334_v8 = vadd.f32 %v1330_v4, %v1253_v3 }
 0x3e3   :  { %v1944_v9 = vpop.f32.mrf.mxu0 }
 0x3e4   :  { %v1341_v11 = vadd.f32 %v1339_v6, %v1334_v8 }
 0x3e6   :  { %v1342_v13 = vmul.f32 0.70710677, %v1341_v11  ;;  %v1367_v41 = vmul.f32 0.5, %v1341_v11 }
 0x3e8   :  { %vm1343_vm10 = vcmp.ge.f32.partialorder %v1342_v13, 0.0  ;;  %v1344_v15 = vsub.f32 0.0, %v1342_v13 }
 0x3ea   :  { %v1345_v16 = vsel %vm1343_vm10, %v1342_v13, %v1344_v15 }
 0x3eb   :  { %v1346_v17 = vmul.f32 0.3275911, %v1345_v16  ;;  %v1359_v21 = vsub.f32 0.0, %v1345_v16 }
 0x3ed   :  { %v1347_v20 = vadd.f32 1.0, %v1346_v17  ;;  %v1360_v23 = vmul.f32 %v1359_v21, %v1345_v16 }
 0x3ef   :  { %1989 = vrcp.f32 %v1347_v20  ;;  %v1361_v25 = vmul.f32 1.442695, %v1360_v23 }
 0x3f1   :  { %1991 = vpow2.f32 %v1361_v25 }
 0x3fc   :  { %v1990_v7 = vpop.eup %1989 }
 0x3fd   :  { %v1350_v27 = vmul.f32 1.0614054, %v1990_v7 }
 0x3fe   :  { %v1992_v38 = vpop.eup %1991 }
 0x3ff   :  { %v1823_v29 = vadd.f32 -1.4531521, %v1350_v27 }
 0x401   :  { %v1352_v30 = vmul.f32 %v1990_v7, %v1823_v29 }
 0x403   :  { %v1353_v31 = vadd.f32 1.4214138, %v1352_v30 }
 0x405   :  { %v1354_v33 = vmul.f32 %v1990_v7, %v1353_v31 }
 0x407   :  { %v1824_v34 = vadd.f32 -0.28449672, %v1354_v33 }
 0x409   :  { %v1356_v35 = vmul.f32 %v1990_v7, %v1824_v34 }
 0x40b   :  { %v1357_v36 = vadd.f32 0.2548296, %v1356_v35 }
 0x40d   :  { %v1358_v37 = vmul.f32 %v1990_v7, %v1357_v36 }
 0x40f   :  { %v1363_v39 = vmul.f32 %v1992_v38, %v1358_v37 }
 0x411   :  { %v1364_v10 = vsub.f32 1.0, %v1363_v39 }
 0x413   :  { %v1365_v40 = vsub.f32 0.0, %v1364_v10 }
 0x415   :  { %v1366_v5 = vsel %vm1343_vm10, %v1364_v10, %v1365_v40 }
 0x416   :  { %v1368_v42 = vadd.f32 1.0, %v1366_v5 }
 0x418   :  { %v1369_v14 = vmul.f32 %v1368_v42, %v1367_v41 }
 0x41a   :  { %1371 = vrot.lane.b32.xlu1 %v1369_v14, %s2064_s3 }
 0x48c   :  { %v1372_v43 = vpop.permute.xlu1 %1371 }
 0x48d   :  { %1374 = vst.msk [vmem:[#allocation2] sm:$0xff] %vm58_vm2, %v1372_v43 }
 0x48e   :  { %1375 = vst.msk [vmem:[#allocation2 + $0x8] sm:$0xff] %vm49_vm0, %v1372_v43 }
 0x494   :  { %v1377_v44 = vld [vmem:[#allocation2] sm:$0xff] }
 0x495   :  { %v1379_v18 = vld [vmem:[#allocation2 + $0x8] sm:$0xff]  ;;  %1382 = vrot.lane.b32.xlu1 %v1377_v44, %s2066_s6  ;;  %1951 = vmatpush3.msra.mxu0 %v1377_v44 }
 0x496   :  { %1384 = vrot.lane.b32.xlu0 %v1379_v18, %s2066_s6  ;;  %1953 = vmatmul.mubr.msk.f32.vlgmr.msra.gmra.mxu0 %vm75_vm4, %v2197_v12  ;;  %v1777_v12 = vld [vmem:[%s2338_s4] sm:$0xff]  ;;  %s2071_s4 = smov [#allocation8]  }
 0x497   :  { %1960 = vmatprep.subr.mxu0 %v2063_v0  ;;  %1962 = vmatprep.mubr.msk.f32.mxu0 %vm2065_vm3, %v2063_v0  ;;  %s1792_s14 = sshll.u32 %s2071_s4, 4  ;;  %s1793_s14 = int_to_ptr.vmem [resolvable:$true] %s1792_s14 }
 0x498   :  { %s2033_s15 = scalar_lea.vmem %s1793_s14, 256  ;;  %p2038_p11 = scmp.lt.s32.totalorder %s1793_s14, %s1793_s14 }
 0x499   :  { %1535 = vrot.lane.b32.xlu1 %v1377_v44, %s2068_s7  ;;  %p2034_p10 = scmp.ne.s32.totalorder %s1793_s14, %s2033_s15  ;;  %p2039_p12 = scmp.lt.s32.totalorder %s2033_s15, %s2033_s15 }
 0x49a   :  { %1537 = vrot.lane.b32.xlu0 %v1379_v18, %s2068_s7 }
 0x49b   :  { %p2040_p13 = por %p2039_p12, %p2038_p11 }
 0x49d   :  { %1616 = vrot.lane.b32.xlu1 %v1377_v44, %s2069_s8  ;;  %p2041_p0 = pnand %p2040_p13, %p2034_p10 }
 0x49e   :  { %1618 = vrot.lane.b32.xlu0 %v1379_v18, %s2069_s8 }
 0x4a1   :  { %1697 = vrot.lane.b32.xlu1 %v1377_v44, %s2070_s9 }
 0x4a2   :  { %1699 = vrot.lane.b32.xlu0 %v1379_v18, %s2070_s9 }
 0x4a5   :  { %920 = vperm.xlu1 %1983, %v1777_v12  }
 0x4a6   :  { %1780 = vperm.xlu0 %1984, %v1777_v12  }
 0x507   :  { %v1383_v46 = vpop.permute.xlu1 %1382 }
 0x508   :  { %v1385_v45 = vpop.permute.xlu0 %1384 }
 0x509   :  { %v1386_v47 = vsel %vm72_vm5, %v1383_v46, %v1385_v45 }
 0x50a   :  { %1946 = vmatpush3.msra.mxu1 %v1386_v47 }
 0x50b   :  { %1955 = vmatprep.subr.mxu1 %v2063_v0  ;;  %1948 = vmatmul.mubr.msk.f32.vlgmr.msra.gmra.mxu1 %vm75_vm4, %v2223_v19  ;;  %v1536_v49 = vpop.permute.xlu1 %1535 }
 0x50c   :  { %v1538_v48 = vpop.permute.xlu0 %1537  ;;  %1957 = vmatprep.mubr.msk.f32.mxu1 %vm2065_vm3, %v2063_v0 }
 0x50d   :  { %v1539_v50 = vsel %vm228_vm6, %v1536_v49, %v1538_v48 }
 0x50e   :  { %1956 = vmatpush3.msra.mxu1 %v1539_v50 }
 0x50f   :  { %1958 = vmatmul.mubr.msk.f32.vlgmr.msra.gmra.mxu1 %vm75_vm4, %v2231_v24  ;;  %1965 = vmatprep.subr.mxu1 %v2063_v0  ;;  %v1617_v52 = vpop.permute.xlu1 %1616 }
 0x510   :  { %v1619_v51 = vpop.permute.xlu0 %1618  ;;  %1967 = vmatprep.mubr.msk.f32.mxu1 %vm2065_vm3, %v2063_v0 }
 0x511   :  { %v1620_v19 = vsel %vm311_vm7, %v1617_v52, %v1619_v51 }
 0x512   :  { %1961 = vmatpush3.msra.mxu0 %v1620_v19 }
 0x513   :  { %1963 = vmatmul.mubr.msk.f32.vlgmr.msra.gmra.mxu0 %vm75_vm4, %v2239_v28  ;;  %v1698_v22 = vpop.permute.xlu1 %1697 }
 0x514   :  { %v1700_v53 = vpop.permute.xlu0 %1699 }
 0x515   :  { %v1701_v55 = vsel %vm394_vm8, %v1698_v22, %v1700_v53 }
 0x516   :  { %1966 = vmatpush3.msra.mxu1 %v1701_v55 }
 0x517   :  { %1968 = vmatmul.mubr.msk.f32.vlgmr.msra.gmra.mxu1 %vm75_vm4, %v2245_v32 }
 0x520   :  { %v921_v24 = vpop.permute.xlu1 %920 }
 0x521   :  { %v923_v56 = vadd.f32 %v921_v24, %v2284_v54  ;;  %v1781_v32 = vpop.permute.xlu0 %1780 }
 0x523   :  { %v924_v57 = vadd.f32 %v923_v56, %v2122_v1 }
 0x525   :  { %925 = vst [vmem:[#allocation8] sm:$0xff] %v924_v57 }
 0x556   :  { %v1530_v0 = vpop.f32.mrf.mxu0 }
 0x558   :  { %v1954_v58 = vpop.f32.mrf.mxu0 }
 0x5cb   :  { %v1457_v59 = vpop.f32.mrf.mxu1 }
 0x5cc   :  { %v1531_v61 = vadd.f32 %v1530_v0, %v1457_v59 }
 0x5cd   :  { %v1949_v60 = vpop.f32.mrf.mxu1 }
 0x5cf   :  { %v1610_v28 = vpop.f32.mrf.mxu1 }
 0x5d0   :  { %v1614_v63 = vadd.f32 %v1610_v28, %v1531_v61 }
 0x5d1   :  { %v1959_v62 = vpop.f32.mrf.mxu1 }
 0x5d3   :  { %v1691_v2 = vpop.f32.mrf.mxu0 }
 0x5d4   :  { %v1695_v4 = vadd.f32 %v1691_v2, %v1614_v63 }
 0x5d5   :  { %v1964_v3 = vpop.f32.mrf.mxu0 }
 0x5d7   :  { %v1772_v6 = vpop.f32.mrf.mxu1 }
 0x5d8   :  { %v1776_v8 = vadd.f32 %v1772_v6, %v1695_v4 }
 0x5d9   :  { %v1969_v9 = vpop.f32.mrf.mxu1 }
 0x5da   :  { %v1783_v54 = vadd.f32 %v1781_v32, %v1776_v8 }
 0x5dc   :  { %v1784_v1 = vadd.f32 %v2188_v26, %v1783_v54 }
 0x5de   :  { %1786 = vst [vmem:[#allocation8 + $0x8] sm:$0xff] %v1784_v1 }
 0x5df   :  { %2044 = shalt.err (!%p2041_p0)
}
 0x5e0   :  { %1798 = dma.vmem_to_hbm [thread:$0]  %s1793_s14, 256, %s2339_s5, [#allocation5], %s2060_s21, %s2060_s21, %s2061_s22  }
 0x5e1   :  { %2057 = dma.done.wait [#allocation5], 256  }
 0x5e2   :  { %2058 = vsyncadd [#allocation5], 4294967040 }
 0x5e3   :  { %1802 = vsyncpa [#allocation4], 1 }
 0x5e4   :  { %1803 = vsyncpa [#allocation7], 1 }
 0x5e5   :  { %1804 = vsyncpa [#allocation5], 1 }

</bundles_post_ra>
